<compile_context>
chip_gen: v5e
topology: v5e:2x2
jax: 0.10.0
libtpu: 0.0.40
codegen_flags: <defaults>
</compile_context>

<pallas_src>
import math
import functools

import jax
import jax.numpy as jnp
from jax import lax
from jax.experimental import pallas as pl
from jax.experimental.pallas import tpu as pltpu


def _subnet_kernel(x_ref, w1_ref, b1_ref, w2_ref, b2_ref, w3_ref, b3_ref,
                   o_ref, *, out_dim_sqrt):
    cd = w1_ref.dtype                      # MXU input dtype (bf16 by default)
    x = x_ref[...].astype(cd)              # in-kernel cast: f32 HBM -> bf16 vregs

    # Layer 1: Linear + ReLU   (bf16 MXU inputs, f32 accumulate, f32 bias add)
    h1 = jnp.dot(x, w1_ref[...], preferred_element_type=jnp.float32) + b1_ref[...]
    h1 = jnp.maximum(h1, 0.0)
    # Layer 2: Linear + ReLU
    h2 = jnp.dot(h1.astype(cd), w2_ref[...],
                 preferred_element_type=jnp.float32) + b2_ref[...]
    h2 = jnp.maximum(h2, 0.0)
    # Layer 3: Linear (no activation)
    out = jnp.dot(h2.astype(cd), w3_ref[...],
                  preferred_element_type=jnp.float32) + b3_ref[...]

    # F.normalize(out, p=2, dim=1, eps=1e-12) * sqrt(out_dim)
    # rsqrt goes to the EUP slot; clamping sumsq at eps^2 == clamping norm at eps.
    sumsq = jnp.sum(out * out, axis=-1, keepdims=True)
    inv = lax.rsqrt(jnp.maximum(sumsq, 1e-24))
    o_ref[...] = (out * (inv * out_dim_sqrt)).astype(o_ref.dtype)


def subnet_forward(x, w1, b1, w2, b2, w3, b3, out_dim, *,
                   batch_tile=2048, compute_dtype=jnp.bfloat16,
                   out_dtype=jnp.float32):
    """Fused Subnet forward.

    x: (B, in_dim) float32.  Weights stored as (fan_in, fan_out) (== W^T vs
    nn.Linear), biases as (fan_out,).  Returns (B, out_dim) in `out_dtype`.
    """
    B, in_dim = x.shape
    h1_dim = w1.shape[1]
    h2_dim = w2.shape[1]
    if B == 0:  # zero-size grid guard
        return jnp.zeros((0, out_dim), out_dtype)
    out_dim_sqrt = float(math.sqrt(out_dim))

    # One-time casts of tiny (~12 KiB) parameters only; x is NOT touched here.
    w1c = w1.astype(compute_dtype)
    w2c = w2.astype(compute_dtype)
    w3c = w3.astype(compute_dtype)
    b1r = b1.reshape(1, -1).astype(jnp.float32)
    b2r = b2.reshape(1, -1).astype(jnp.float32)
    b3r = b3.reshape(1, -1).astype(jnp.float32)

    # Batch tile: full batch if it fits in one block (block == full array dims is
    # always legal), otherwise a multiple of 8 (sublane rule) <= batch_tile.
    if B <= batch_tile:
        tb = B
    else:
        tb = max(8, (batch_tile // 8) * 8)
    grid = (pl.cdiv(B, tb),)  # ragged last block handled by masked writeback

    out = pl.pallas_call(
        functools.partial(_subnet_kernel, out_dim_sqrt=out_dim_sqrt),
        out_shape=jax.ShapeDtypeStruct((B, out_dim), out_dtype),
        grid=grid,
        in_specs=[
            pl.BlockSpec((tb, in_dim), lambda i: (i, 0)),       # x: batch-tiled, f32
            pl.BlockSpec((in_dim, h1_dim), lambda i: (0, 0)),   # W1: VMEM-resident
            pl.BlockSpec((1, h1_dim), lambda i: (0, 0)),        # b1
            pl.BlockSpec((h1_dim, h2_dim), lambda i: (0, 0)),   # W2
            pl.BlockSpec((1, h2_dim), lambda i: (0, 0)),        # b2
            pl.BlockSpec((h2_dim, out_dim), lambda i: (0, 0)),  # W3
            pl.BlockSpec((1, out_dim), lambda i: (0, 0)),       # b3
        ],
        out_specs=pl.BlockSpec((tb, out_dim), lambda i: (i, 0)),
        compiler_params=pltpu.CompilerParams(
            dimension_semantics=("parallel",),      # batch rows are independent
            vmem_limit_bytes=32 * 1024 * 1024,      # safe on v5e/v6e/v7x; ~4x headroom at tb=2048
        ),
    )(x, w1c, b1r, w2c, b2r, w3c, b3r)
    return out


def init_params(key, in_dim, c_hidden_1, c_hidden_2, out_dim):
    """Deterministic synthetic parameters (PyTorch-Linear-style uniform init)."""
    ks = jax.random.split(key, 6)

    def linear_init(kw, kb, fan_in, fan_out):
        bound = 1.0 / math.sqrt(fan_in)
        # stored as (fan_in, fan_out) == W^T relative to nn.Linear
        w = jax.random.uniform(kw, (fan_in, fan_out), jnp.float32, -bound, bound)
        b = jax.random.uniform(kb, (fan_out,), jnp.float32, -bound, bound)
        return w, b

    w1, b1 = linear_init(ks[0], ks[1], in_dim, c_hidden_1)
    w2, b2 = linear_init(ks[2], ks[3], c_hidden_1, c_hidden_2)
    w3, b3 = linear_init(ks[4], ks[5], c_hidden_2, out_dim)
    return w1, b1, w2, b2, w3, b3


def _ref_forward(x, w1, b1, w2, b2, w3, b3, out_dim, compute_dtype):
    """Plain-JAX reference replicating the kernel's numerics (bf16 MXU, f32 acc)."""
    cd = compute_dtype
    h1 = jnp.maximum(
        jnp.dot(x.astype(cd), w1.astype(cd), preferred_element_type=jnp.float32) + b1, 0.0)
    h2 = jnp.maximum(
        jnp.dot(h1.astype(cd), w2.astype(cd), preferred_element_type=jnp.float32) + b2, 0.0)
    o = jnp.dot(h2.astype(cd), w3.astype(cd), preferred_element_type=jnp.float32) + b3
    n = jnp.maximum(jnp.linalg.norm(o, axis=1, keepdims=True), 1e-12)
    return o / n * math.sqrt(out_dim)


def _ref_forward_f32(x, w1, b1, w2, b2, w3, b3, out_dim):
    """Full-precision reference (exact PyTorch-module math)."""
    h1 = jnp.maximum(x @ w1 + b1, 0.0)
    h2 = jnp.maximum(h1 @ w2 + b2, 0.0)
    o = h2 @ w3 + b3
    n = jnp.maximum(jnp.linalg.norm(o, axis=1, keepdims=True), 1e-12)
    return o / n * math.sqrt(out_dim)


if __name__ == "__main__":
    in_dim, c_hidden_1, c_hidden_2, out_dim = 32, 64, 48, 16

    key = jax.random.PRNGKey(0)
    k_x, k_p, k_x2, k_x3 = jax.random.split(key, 4)
    w1, b1, w2, b2, w3, b3 = init_params(k_p, in_dim, c_hidden_1, c_hidden_2, out_dim)

    # --- Test 1: tiny batch (typical usage), single grid step, block == full array.
    batch = 2
    x = jax.random.normal(k_x, (batch, in_dim), jnp.float32)
    out = subnet_forward(x, w1, b1, w2, b2, w3, b3, out_dim)
    out = jax.block_until_ready(out)
    ref = _ref_forward(x, w1, b1, w2, b2, w3, b3, out_dim, jnp.bfloat16)
    ref_f32 = _ref_forward_f32(x, w1, b1, w2, b2, w3, b3, out_dim)
    assert out.shape == (batch, out_dim)
    assert jnp.allclose(out, ref, atol=2e-3, rtol=2e-3)          # same-numerics check
    assert jnp.allclose(out, ref_f32, atol=1e-1, rtol=1e-1)      # semantic sanity (bf16 quant)

    # --- Test 2: ragged tail via cdiv grid (no wrapper pad/slice):
    #     B=50, tile=16 -> 4 grid steps, last block has 2 valid of 16 rows.
    batch2 = 50
    x2 = jax.random.normal(k_x2, (batch2, in_dim), jnp.float32)
    out2 = subnet_forward(x2, w1, b1, w2, b2, w3, b3, out_dim, batch_tile=16)
    out2 = jax.block_until_ready(out2)
    ref2 = _ref_forward(x2, w1, b1, w2, b2, w3, b3, out_dim, jnp.bfloat16)
    assert out2.shape == (batch2, out_dim)
    assert jnp.allclose(out2, ref2, atol=2e-3, rtol=2e-3)
    assert bool(jnp.all(jnp.isfinite(out2)))                     # OOB rows never leak

    # --- Test 3: multi-step default tile (tb=2048) with a ragged last block.
    batch3 = 2500
    x3 = jax.random.normal(k_x3, (batch3, in_dim), jnp.float32)
    out3 = subnet_forward(x3, w1, b1, w2, b2, w3, b3, out_dim)
    out3 = jax.block_until_ready(out3)
    ref3 = _ref_forward(x3, w1, b1, w2, b2, w3, b3, out_dim, jnp.bfloat16)
    assert out3.shape == (batch3, out_dim)
    assert jnp.allclose(out3, ref3, atol=2e-3, rtol=2e-3)

    print("KERNEL_OK")
</pallas_src>

<mosaic_0001>
module attributes {stable_mosaic.version = 11 : i64} {
  func.func @_subnet_kernel(%arg0: i32, %arg1: memref<2x32xf32, #tpu.memory_space<vmem>>, %arg2: memref<32x64xbf16, #tpu.memory_space<vmem>>, %arg3: memref<1x64xf32, #tpu.memory_space<vmem>>, %arg4: memref<64x48xbf16, #tpu.memory_space<vmem>>, %arg5: memref<1x48xf32, #tpu.memory_space<vmem>>, %arg6: memref<48x16xbf16, #tpu.memory_space<vmem>>, %arg7: memref<1x16xf32, #tpu.memory_space<vmem>>, %arg8: memref<2x16xf32, #tpu.memory_space<vmem>>) attributes {dimension_semantics = [#tpu.dimension_semantics<parallel>], iteration_bounds = array<i64: 1>, scalar_prefetch = 0 : i64, scratch_operands = 0 : i64, tpu.core_type = #tpu.core_type<tc>, window_params = [{transform_indices = @transform_0, window_bounds = array<i64: 2, 32>}, {pipeline_mode = #tpu.pipeline_mode<synchronous>, transform_indices = @transform_1, window_bounds = array<i64: 32, 64>}, {pipeline_mode = #tpu.pipeline_mode<synchronous>, transform_indices = @transform_2, window_bounds = array<i64: 1, 64>}, {pipeline_mode = #tpu.pipeline_mode<synchronous>, transform_indices = @transform_3, window_bounds = array<i64: 64, 48>}, {pipeline_mode = #tpu.pipeline_mode<synchronous>, transform_indices = @transform_4, window_bounds = array<i64: 1, 48>}, {pipeline_mode = #tpu.pipeline_mode<synchronous>, transform_indices = @transform_5, window_bounds = array<i64: 48, 16>}, {pipeline_mode = #tpu.pipeline_mode<synchronous>, transform_indices = @transform_6, window_bounds = array<i64: 1, 16>}, {transform_indices = @transform_7, window_bounds = array<i64: 2, 16>}]} {
    %c0 = arith.constant 0 : index
    %c0_0 = arith.constant 0 : index
    %0 = vector.load %arg1[%c0, %c0_0] : memref<2x32xf32, #tpu.memory_space<vmem>>, vector<2x32xf32>
    %1 = arith.truncf %0 : vector<2x32xf32> to vector<2x32xbf16>
    %c0_1 = arith.constant 0 : index
    %c0_2 = arith.constant 0 : index
    %2 = vector.load %arg2[%c0_1, %c0_2] : memref<32x64xbf16, #tpu.memory_space<vmem>>, vector<32x64xbf16>
    %cst = arith.constant dense<0.000000e+00> : vector<2x64xf32>
    %3 = tpu.matmul %1, %2, %cst {dimension_numbers = #tpu.dot_dimension_numbers<[1], [0], [0], [1], [0, 0, 1, 1], [], []>} : vector<2x32xbf16>, vector<32x64xbf16>, vector<2x64xf32> -> vector<2x64xf32>
    %c0_3 = arith.constant 0 : index
    %c0_4 = arith.constant 0 : index
    %4 = vector.load %arg3[%c0_3, %c0_4] : memref<1x64xf32, #tpu.memory_space<vmem>>, vector<1x64xf32>
    %5 = vector.broadcast %4 : vector<1x64xf32> to vector<2x64xf32>
    %6 = arith.addf %3, %5 : vector<2x64xf32>
    %cst_5 = arith.constant 0.000000e+00 : f32
    %7 = vector.broadcast %cst_5 : f32 to vector<2x64xf32>
    %8 = arith.maximumf %6, %7 : vector<2x64xf32>
    %9 = arith.truncf %8 : vector<2x64xf32> to vector<2x64xbf16>
    %c0_6 = arith.constant 0 : index
    %c0_7 = arith.constant 0 : index
    %10 = vector.load %arg4[%c0_6, %c0_7] : memref<64x48xbf16, #tpu.memory_space<vmem>>, vector<64x48xbf16>
    %cst_8 = arith.constant dense<0.000000e+00> : vector<2x48xf32>
    %11 = tpu.matmul %9, %10, %cst_8 {dimension_numbers = #tpu.dot_dimension_numbers<[1], [0], [0], [1], [0, 0, 1, 1], [], []>} : vector<2x64xbf16>, vector<64x48xbf16>, vector<2x48xf32> -> vector<2x48xf32>
    %c0_9 = arith.constant 0 : index
    %c0_10 = arith.constant 0 : index
    %12 = vector.load %arg5[%c0_9, %c0_10] : memref<1x48xf32, #tpu.memory_space<vmem>>, vector<1x48xf32>
    %13 = vector.broadcast %12 : vector<1x48xf32> to vector<2x48xf32>
    %14 = arith.addf %11, %13 : vector<2x48xf32>
    %cst_11 = arith.constant 0.000000e+00 : f32
    %15 = vector.broadcast %cst_11 : f32 to vector<2x48xf32>
    %16 = arith.maximumf %14, %15 : vector<2x48xf32>
    %17 = arith.truncf %16 : vector<2x48xf32> to vector<2x48xbf16>
    %c0_12 = arith.constant 0 : index
    %c0_13 = arith.constant 0 : index
    %18 = vector.load %arg6[%c0_12, %c0_13] : memref<48x16xbf16, #tpu.memory_space<vmem>>, vector<48x16xbf16>
    %cst_14 = arith.constant dense<0.000000e+00> : vector<2x16xf32>
    %19 = tpu.matmul %17, %18, %cst_14 {dimension_numbers = #tpu.dot_dimension_numbers<[1], [0], [0], [1], [0, 0, 1, 1], [], []>} : vector<2x48xbf16>, vector<48x16xbf16>, vector<2x16xf32> -> vector<2x16xf32>
    %c0_15 = arith.constant 0 : index
    %c0_16 = arith.constant 0 : index
    %20 = vector.load %arg7[%c0_15, %c0_16] : memref<1x16xf32, #tpu.memory_space<vmem>>, vector<1x16xf32>
    %21 = vector.broadcast %20 : vector<1x16xf32> to vector<2x16xf32>
    %22 = arith.addf %19, %21 : vector<2x16xf32>
    %23 = arith.mulf %22, %22 : vector<2x16xf32>
    %cst_17 = arith.constant dense<0.000000e+00> : vector<2xf32>
    %24 = vector.multi_reduction <add>, %23, %cst_17 [1] : vector<2x16xf32> to vector<2xf32>
    %25 = vector.shape_cast %24 : vector<2xf32> to vector<2x1xf32>
    %cst_18 = arith.constant 1.000000e-24 : f32
    %26 = vector.broadcast %cst_18 : f32 to vector<2x1xf32>
    %27 = arith.maximumf %25, %26 : vector<2x1xf32>
    %28 = math.rsqrt %27 : vector<2x1xf32>
    %cst_19 = arith.constant 4.000000e+00 : f32
    %29 = vector.broadcast %cst_19 : f32 to vector<2x1xf32>
    %30 = arith.mulf %28, %29 : vector<2x1xf32>
    %31 = vector.broadcast %30 : vector<2x1xf32> to vector<2x16xf32>
    %32 = arith.mulf %22, %31 : vector<2x16xf32>
    %c0_20 = arith.constant 0 : index
    %c0_21 = arith.constant 0 : index
    %33 = vector.load %arg8[%c0_20, %c0_21] : memref<2x16xf32, #tpu.memory_space<vmem>>, vector<2x16xf32>
    tpu.vector_store %arg8[%c0_20, %c0_21], %32 {strides = array<i32>} : memref<2x16xf32, #tpu.memory_space<vmem>>, vector<2x16xf32>,
    return
  }
  func.func @transform_0(%arg0: i32) -> (i32, i32) {
    %c0_i32 = arith.constant 0 : i32
    %c0_i32_0 = arith.constant 0 : i32
    return %arg0, %c0_i32 : i32, i32
  }
  func.func @transform_1(%arg0: i32) -> (i32, i32) {
    %c0_i32 = arith.constant 0 : i32
    %c0_i32_0 = arith.constant 0 : i32
    %c0_i32_1 = arith.constant 0 : i32
    return %c0_i32, %c0_i32_0 : i32, i32
  }
  func.func @transform_2(%arg0: i32) -> (i32, i32) {
    %c0_i32 = arith.constant 0 : i32
    %c0_i32_0 = arith.constant 0 : i32
    %c0_i32_1 = arith.constant 0 : i32
    return %c0_i32, %c0_i32_0 : i32, i32
  }
  func.func @transform_3(%arg0: i32) -> (i32, i32) {
    %c0_i32 = arith.constant 0 : i32
    %c0_i32_0 = arith.constant 0 : i32
    %c0_i32_1 = arith.constant 0 : i32
    return %c0_i32, %c0_i32_0 : i32, i32
  }
  func.func @transform_4(%arg0: i32) -> (i32, i32) {
    %c0_i32 = arith.constant 0 : i32
    %c0_i32_0 = arith.constant 0 : i32
    %c0_i32_1 = arith.constant 0 : i32
    return %c0_i32, %c0_i32_0 : i32, i32
  }
  func.func @transform_5(%arg0: i32) -> (i32, i32) {
    %c0_i32 = arith.constant 0 : i32
    %c0_i32_0 = arith.constant 0 : i32
    %c0_i32_1 = arith.constant 0 : i32
    return %c0_i32, %c0_i32_0 : i32, i32
  }
  func.func @transform_6(%arg0: i32) -> (i32, i32) {
    %c0_i32 = arith.constant 0 : i32
    %c0_i32_0 = arith.constant 0 : i32
    %c0_i32_1 = arith.constant 0 : i32
    return %c0_i32, %c0_i32_0 : i32, i32
  }
  func.func @transform_7(%arg0: i32) -> (i32, i32) {
    %c0_i32 = arith.constant 0 : i32
    %c0_i32_0 = arith.constant 0 : i32
    return %arg0, %c0_i32 : i32, i32
  }
}

</mosaic_0001>

<bundles_post_ra>
// kernel: tpu_custom_call.1
= control target key start
LH: loop header
LB: loop body
LE: loop exit
PB: predicated region body
PF: predicated region fallthrough
CT: control target
= control target key end

     0   :  { %s369_s0 = inlined_call_operand.vmem [shape: f32[2,32], index: 0, kind: input, shape index: {}]   ;;  %s370_s1 = inlined_call_operand.vmem [shape: bf16[32,64], index: 1, kind: input, shape index: {}]   ;;  %s371_s2 = inlined_call_operand.vmem [shape: f32[1,64], index: 2, kind: input, shape index: {}]   ;;  %s372_s3 = inlined_call_operand.vmem [shape: bf16[64,48], index: 3, kind: input, shape index: {}]   ;;  %s373_s4 = inlined_call_operand.vmem [shape: f32[1,48], index: 4, kind: input, shape index: {}]   ;;  %s374_s5 = inlined_call_operand.vmem [shape: bf16[48,16], index: 5, kind: input, shape index: {}]   ;;  %s375_s6 = inlined_call_operand.vmem [shape: f32[1,16], index: 6, kind: input, shape index: {}]   ;;  %s376_s7 = inlined_call_operand.hbm [shape: f32[2,16], index: 7, kind: output, shape index: {}]  }
   0x1   :  { %v244_v0 = vld [vmem:[%s370_s1 + $0x8] sm:$0xff]  ;;  %v243_v1 = vld [vmem:[%s370_s1] sm:$0xff]  ;;  %v248_v2 = vld [vmem:[%s372_s3 + $0x18] sm:$0xff] }
   0x2   :  { %60 = vmatpush.bf16.msra.mxu0 %v244_v0  ;;  %v28_v3 = vld [vmem:[%s369_s0] sm:$0x3]  ;;  %113 = vmatpush.bf16.msra.mxu1 %v248_v2  ;;  %v247_v4 = vld [vmem:[%s372_s3 + $0x10] sm:$0xff] }
   0x3   :  { %12 = vsyncpa [#allocation3], 0  ;;  %v29_v5 = vpack.c.bf16 %v28_v3, %v28_v3  ;;  %vm50_vm0 = vcmask 261120   ;;  %v246_v6 = vld [vmem:[%s372_s3 + $0x8] sm:$0xff]  ;;  %v245_v7 = vld [vmem:[%s372_s3] sm:$0xff]  ;;  %vm105_vm1 = vcmask 523264  }
   0x4   :  { %v251_v8 = vld [vmem:[%s374_s5 + $0x10] sm:$0xff]  ;;  %v253_v9 = vld [vmem:[%s371_s2] ss:$0 sm:$0xff]  ;;  %v250_v15 = vld [vmem:[%s374_s5 + $0x8] sm:$0xff]  ;;  %vm152_vm2 = vcmask 392192   ;;  %vm170_vm3 = vcmask 123904  }
   0x5   :  { %161 = vmatpush.bf16.msra.mxu2 %v251_v8  ;;  %v249_v16 = vld [vmem:[%s374_s5] sm:$0xff]  ;;  %s195_s24 = sshll.u32 %s376_s7, 4  ;;  %s196_s24 = int_to_ptr.hbm [resolvable:$true] %s195_s24 }
   0x6   :  { %61 = vmatpush.bf16.msra.mxu0 %v243_v1  ;;  %114 = vmatpush.bf16.msra.mxu1 %v247_v4  ;;  %v254_v17 = vld [vmem:[%s373_s4] ss:$0 sm:$0xff]  ;;  %s284_s4 = smov [#allocation2]  }
   0x7   :  { %v255_v23 = vld [vmem:[%s375_s6] ss:$0 sm:$0xff]  ;;  %s193_s5 = sshll.u32 %s284_s4, 4  ;;  %s194_s5 = int_to_ptr.vmem [resolvable:$true] %s193_s5 }
   0x9   :  { %212 = vmatmul.msk.bf16.vlgmr.msra.gmra.mxu0 %vm50_vm0, %v29_v5  ;;  %162 = vmatpush.bf16.msra.mxu2 %v250_v15 }
   0xa   :  { %115 = vmatpush.bf16.msra.mxu1 %v246_v6 }
   0xd   :  { %163 = vmatpush.bf16.msra.mxu2 %v249_v16 }
   0xe   :  { %116 = vmatpush.bf16.msra.mxu1 %v245_v7 }
  0x86   :  { %v63_v10 = vpop.f32.mrf.mxu0 }
  0x87   :  { %v64_v11 = vadd.f32 %v253_v9, %v63_v10 }
  0x89   :  { %v67_v12 = vmax.f32 %v64_v11, 0.0 }
  0x8b   :  { %v68_v13 = vpack.c.bf16 %v67_v12, %v67_v12 }
  0x8d   :  { %229 = vmatmul.msk.bf16.vlgmr.msra.gmra.mxu1 %vm105_vm1, %v68_v13 }
  0x8e   :  { %v65_v14 = vpop.f32.mrf.mxu0 }
 0x10a   :  { %v118_v18 = vpop.f32.mrf.mxu1 }
 0x10b   :  { %v119_v19 = vadd.f32 %v254_v17, %v118_v18 }
 0x10d   :  { %v122_v20 = vmax.f32 %v119_v19, 0.0 }
 0x10f   :  { %v123_v21 = vpack.c.bf16 %v122_v20, %v122_v20 }
 0x111   :  { %242 = vmatmul.msk.bf16.vlgmr.msra.gmra.mxu2 %vm152_vm2, %v123_v21 }
 0x112   :  { %v120_v22 = vpop.f32.mrf.mxu1 }
 0x194   :  { %v165_v24 = vpop.f32.mrf.mxu2 }
 0x195   :  { %v166_v25 = vadd.f32 %v255_v23, %v165_v24 }
 0x197   :  { %v169_v26 = vmul.f32 %v166_v25, %v166_v25 }
 0x199   :  { %v171_v27 = vsel %vm170_vm3, %v169_v26, 0.0 }
 0x19a   :  { %172 = vadd.xlane.f32.xlu0 %v171_v27 }
 0x19c   :  { %v167_v28 = vpop.f32.mrf.mxu2 }
 0x20d   :  { %v173_v29 = vpop.xlane.xlu0 %172 }
 0x20e   :  { %v174_v30 = vmax.f32 %v173_v29, 1e-24 }
 0x210   :  { %256 = vrsqrt.f32 %v174_v30  ;;  %vm181_vm5 = vweird.f32 %v174_v30 }
 0x216   :  { %v257_v31 = vpop.eup %256 }
 0x217   :  { %v176_v32 = vmul.f32 %v257_v31, %v174_v30  ;;  %vm182_vm4 = vweird.f32 %v257_v31 }
 0x218   :  { %vm183_vm6 = vmor %vm181_vm5, %vm182_vm4 }
 0x219   :  { %v177_v33 = vmul.f32 %v257_v31, %v176_v32 }
 0x21b   :  { %v178_v34 = vmul.f32 0.5, %v177_v33 }
 0x21d   :  { %v179_v35 = vsub.f32 1.5, %v178_v34 }
 0x21f   :  { %v180_v36 = vmul.f32 %v257_v31, %v179_v35 }
 0x221   :  { %v184_v37 = vsel %vm183_vm6, %v257_v31, %v180_v36 }
 0x222   :  { %v185_v38 = vmul.f32 4.0, %v184_v37 }
 0x224   :  { %v186_v39 = vmul.f32 %v185_v38, %v166_v25 }
 0x226   :  { %187 = vst.msk [vmem:[#allocation2] sm:$0x3] %vm170_vm3, %v186_v39 }
 0x227   :  { %198 = dma.vmem_to_hbm [thread:$0]  %s194_s5, 32, %s196_s24, [#allocation3]  }
 0x228   :  { %282 = dma.done.wait [#allocation3], 32  }
 0x229   :  { %283 = vsyncadd [#allocation3], 4294967264 }
 0x22a   :  { %203 = vsyncpa [#allocation3], 1 }

</bundles_post_ra>
